<compile_context>
chip_gen: v6e
topology: v6e:2x2x1
jax: 0.10.0
libtpu: 0.0.40
codegen_flags: <defaults>
</compile_context>

<pallas_src>
import jax
import jax.numpy as jnp
from jax.experimental import pallas as pl
from jax.experimental.pallas import tpu as pltpu

LANE = 128  # vocab padding granularity (lane-dense logits store)


def _decoder_kernel(ids_ref,        # [B]         int32  SMEM
                    emb_ref,        # [V, E]      f32    VMEM (whole table)
                    h_ref,          # [B, H]      f32    VMEM
                    wcell_ref,      # [E+H, H]    bf16   VMEM ([W_ih ; W_hh])
                    bias_ref,       # [1, H]      f32    VMEM (b_ih + b_hh)
                    wfc_ref,        # [H, V_pad]  bf16   VMEM
                    bfc_ref,        # [1, V_pad]  f32    VMEM
                    pred_ref,       # out [B, V_pad] f32
                    hnew_ref,       # out [B, H]     f32
                    xh_scratch):    # [B, E+H]    f32    VMEM scratch
    B, _ = xh_scratch.shape
    E = emb_ref.shape[1]

    # Embedding gather: dynamic row reads from the VMEM-resident table into
    # lanes [0:E) of the fused (x | h) activation; h goes into lanes [E:E+H).
    for b in range(B):
        tok = ids_ref[b]
        xh_scratch[b:b + 1, 0:E] = emb_ref[pl.ds(tok, 1), :]
    xh_scratch[:, E:] = h_ref[...]

    # Dropout is the identity here (p = 0.0).
    # Fused RNN(tanh) cell: one K = E+H (=128) MXU pass, f32 accumulation.
    xh = xh_scratch[...].astype(jnp.bfloat16)                    # [B, E+H]
    pre = (jnp.dot(xh, wcell_ref[...], preferred_element_type=jnp.float32)
           + bias_ref[...])                                      # [B, H] f32
    h_new = jnp.tanh(pre)
    hnew_ref[...] = h_new

    # fc_out projection over the (padded) vocab in a single MXU pass.
    pred_ref[...] = (jnp.dot(h_new.astype(jnp.bfloat16), wfc_ref[...],
                             preferred_element_type=jnp.float32)
                     + bfc_ref[...])


def prepare_params(raw_params):
    """One-time weight preprocessing (per model, NOT per decode step)."""
    emb, w_ih, b_ih, w_hh, b_hh, w_fc, b_fc = raw_params
    V, E = emb.shape
    H = w_hh.shape[0]
    V_pad = pl.cdiv(V, LANE) * LANE
    return dict(
        emb=emb.astype(jnp.float32),                                   # [V, E]
        w_cell=jnp.concatenate([w_ih, w_hh], axis=0).astype(jnp.bfloat16),  # [E+H, H]
        bias=(b_ih + b_hh).reshape(1, H).astype(jnp.float32),          # [1, H]
        w_fc=jnp.pad(w_fc, ((0, 0), (0, V_pad - V))).astype(jnp.bfloat16),  # [H, V_pad]
        b_fc=jnp.pad(b_fc, (0, V_pad - V)).reshape(1, V_pad).astype(jnp.float32),
        V=V, E=E, H=H, V_pad=V_pad,
    )


def decoder_forward(tokens, hidden, p):
    """tokens: [B] int32, hidden: [1, B, H] f32 -> (prediction [B, V] f32, hidden [1, B, H] f32)."""
    B = tokens.shape[0]
    V, E, H, V_pad = p["V"], p["E"], p["H"], p["V_pad"]
    h0 = hidden[0].astype(jnp.float32)          # [B, H]
    ids = tokens.astype(jnp.int32)              # [B]

    pred, h_new = pl.pallas_call(
        _decoder_kernel,
        out_shape=(jax.ShapeDtypeStruct((B, V_pad), jnp.float32),
                   jax.ShapeDtypeStruct((B, H), jnp.float32)),
        in_specs=[
            pl.BlockSpec(memory_space=pltpu.MemorySpace.SMEM),   # token ids
            pl.BlockSpec(memory_space=pltpu.MemorySpace.VMEM),   # embedding table
            pl.BlockSpec(memory_space=pltpu.MemorySpace.VMEM),   # h0
            pl.BlockSpec(memory_space=pltpu.MemorySpace.VMEM),   # fused W_cell
            pl.BlockSpec(memory_space=pltpu.MemorySpace.VMEM),   # folded bias
            pl.BlockSpec(memory_space=pltpu.MemorySpace.VMEM),   # W_fc (padded)
            pl.BlockSpec(memory_space=pltpu.MemorySpace.VMEM),   # b_fc (padded)
        ],
        out_specs=(
            pl.BlockSpec(memory_space=pltpu.MemorySpace.VMEM),   # logits
            pl.BlockSpec(memory_space=pltpu.MemorySpace.VMEM),   # new hidden
        ),
        scratch_shapes=[pltpu.VMEM((B, E + H), jnp.float32)],    # fused (x | h)
    )(ids, p["emb"], h0, p["w_cell"], p["bias"], p["w_fc"], p["b_fc"])

    return pred[:, :V], h_new[None, :, :]        # hidden back to [1, B, H]


def init_params(key, output_size, embedding_size, hidden_size):
    ks = jax.random.split(key, 7)
    scale = 0.1
    # Weights stored in bf16 (values exactly bf16-representable for the
    # reference); biases kept in f32.  Linear weights are stored already
    # transposed relative to PyTorch ([out, in] -> [in, out]).
    emb = (scale * jax.random.normal(ks[0], (output_size, embedding_size))).astype(jnp.bfloat16)
    w_ih = (scale * jax.random.normal(ks[1], (embedding_size, hidden_size))).astype(jnp.bfloat16)
    b_ih = scale * jax.random.normal(ks[2], (hidden_size,), jnp.float32)
    w_hh = (scale * jax.random.normal(ks[3], (hidden_size, hidden_size))).astype(jnp.bfloat16)
    b_hh = scale * jax.random.normal(ks[4], (hidden_size,), jnp.float32)
    w_fc = (scale * jax.random.normal(ks[5], (hidden_size, output_size))).astype(jnp.bfloat16)
    b_fc = scale * jax.random.normal(ks[6], (output_size,), jnp.float32)
    return (emb, w_ih, b_ih, w_hh, b_hh, w_fc, b_fc)


def _reference(tokens, hidden, raw_params):
    # Pure-JAX reference with the same bf16-valued weights / bf16-rounded MXU
    # inputs (f32 math), so it matches the kernel numerics.
    emb, w_ih, b_ih, w_hh, b_hh, w_fc, b_fc = raw_params
    x = emb[tokens].astype(jnp.float32)                              # [B, E]
    h = hidden[0].astype(jnp.bfloat16).astype(jnp.float32)           # [B, H]
    h_new = jnp.tanh(x @ w_ih.astype(jnp.float32) + b_ih
                     + h @ w_hh.astype(jnp.float32) + b_hh)
    h16 = h_new.astype(jnp.bfloat16).astype(jnp.float32)
    pred = h16 @ w_fc.astype(jnp.float32) + b_fc
    return pred, h_new[None]


if __name__ == "__main__":
    B, V, E, H = 8, 300, 64, 64          # batch, output_size(vocab), embed, hidden
    key = jax.random.PRNGKey(0)
    k_par, k_tok, k_hid = jax.random.split(key, 3)

    raw_params = init_params(k_par, V, E, H)
    params = prepare_params(raw_params)          # one-time, outside decode loop
    tokens = jax.random.randint(k_tok, (B,), 0, V, dtype=jnp.int32)
    hidden = jax.random.normal(k_hid, (1, B, H), jnp.float32)

    pred, h_out = decoder_forward(tokens, hidden, params)
    jax.block_until_ready((pred, h_out))

    pred_ref, h_ref = _reference(tokens, hidden, raw_params)
    assert pred.shape == (B, V) and h_out.shape == (1, B, H)
    assert jnp.allclose(pred, pred_ref, atol=1e-2, rtol=1e-2)
    assert jnp.allclose(h_out, h_ref, atol=1e-2, rtol=1e-2)

    print("KERNEL_OK")
</pallas_src>

<mosaic_0001>
module attributes {stable_mosaic.version = 11 : i64} {
  func.func @_decoder_kernel(%arg0: memref<8xi32, #tpu.memory_space<smem>>, %arg1: memref<300x64xf32, #tpu.memory_space<vmem>>, %arg2: memref<8x64xf32, #tpu.memory_space<vmem>>, %arg3: memref<128x64xbf16, #tpu.memory_space<vmem>>, %arg4: memref<1x64xf32, #tpu.memory_space<vmem>>, %arg5: memref<64x384xbf16, #tpu.memory_space<vmem>>, %arg6: memref<1x384xf32, #tpu.memory_space<vmem>>, %arg7: memref<8x384xf32, #tpu.memory_space<vmem>>, %arg8: memref<8x64xf32, #tpu.memory_space<vmem>>, %arg9: memref<8x128xf32, #tpu.memory_space<vmem>>) attributes {dimension_semantics = [], scalar_prefetch = 0 : i64, scratch_operands = 1 : i64, tpu.core_type = #tpu.core_type<tc>} {
    %c0 = arith.constant 0 : index
    %0 = memref.load %arg0[%c0] : memref<8xi32, #tpu.memory_space<smem>>
    %1 = arith.index_cast %0 : i32 to index
    %c0_0 = arith.constant 0 : index
    %2 = vector.load %arg1[%1, %c0_0] : memref<300x64xf32, #tpu.memory_space<vmem>>, vector<1x64xf32>
    %c0_1 = arith.constant 0 : index
    %c0_2 = arith.constant 0 : index
    %3 = vector.load %arg9[%c0_1, %c0_2] : memref<8x128xf32, #tpu.memory_space<vmem>>, vector<1x64xf32>
    tpu.vector_store %arg9[%c0_1, %c0_2], %2 {strides = array<i32>} : memref<8x128xf32, #tpu.memory_space<vmem>>, vector<1x64xf32>,
    %c1 = arith.constant 1 : index
    %4 = memref.load %arg0[%c1] : memref<8xi32, #tpu.memory_space<smem>>
    %5 = arith.index_cast %4 : i32 to index
    %c0_3 = arith.constant 0 : index
    %6 = vector.load %arg1[%5, %c0_3] : memref<300x64xf32, #tpu.memory_space<vmem>>, vector<1x64xf32>
    %c1_4 = arith.constant 1 : index
    %c0_5 = arith.constant 0 : index
    %7 = vector.load %arg9[%c1_4, %c0_5] : memref<8x128xf32, #tpu.memory_space<vmem>>, vector<1x64xf32>
    tpu.vector_store %arg9[%c1_4, %c0_5], %6 {strides = array<i32>} : memref<8x128xf32, #tpu.memory_space<vmem>>, vector<1x64xf32>,
    %c2 = arith.constant 2 : index
    %8 = memref.load %arg0[%c2] : memref<8xi32, #tpu.memory_space<smem>>
    %9 = arith.index_cast %8 : i32 to index
    %c0_6 = arith.constant 0 : index
    %10 = vector.load %arg1[%9, %c0_6] : memref<300x64xf32, #tpu.memory_space<vmem>>, vector<1x64xf32>
    %c2_7 = arith.constant 2 : index
    %c0_8 = arith.constant 0 : index
    %11 = vector.load %arg9[%c2_7, %c0_8] : memref<8x128xf32, #tpu.memory_space<vmem>>, vector<1x64xf32>
    tpu.vector_store %arg9[%c2_7, %c0_8], %10 {strides = array<i32>} : memref<8x128xf32, #tpu.memory_space<vmem>>, vector<1x64xf32>,
    %c3 = arith.constant 3 : index
    %12 = memref.load %arg0[%c3] : memref<8xi32, #tpu.memory_space<smem>>
    %13 = arith.index_cast %12 : i32 to index
    %c0_9 = arith.constant 0 : index
    %14 = vector.load %arg1[%13, %c0_9] : memref<300x64xf32, #tpu.memory_space<vmem>>, vector<1x64xf32>
    %c3_10 = arith.constant 3 : index
    %c0_11 = arith.constant 0 : index
    %15 = vector.load %arg9[%c3_10, %c0_11] : memref<8x128xf32, #tpu.memory_space<vmem>>, vector<1x64xf32>
    tpu.vector_store %arg9[%c3_10, %c0_11], %14 {strides = array<i32>} : memref<8x128xf32, #tpu.memory_space<vmem>>, vector<1x64xf32>,
    %c4 = arith.constant 4 : index
    %16 = memref.load %arg0[%c4] : memref<8xi32, #tpu.memory_space<smem>>
    %17 = arith.index_cast %16 : i32 to index
    %c0_12 = arith.constant 0 : index
    %18 = vector.load %arg1[%17, %c0_12] : memref<300x64xf32, #tpu.memory_space<vmem>>, vector<1x64xf32>
    %c4_13 = arith.constant 4 : index
    %c0_14 = arith.constant 0 : index
    %19 = vector.load %arg9[%c4_13, %c0_14] : memref<8x128xf32, #tpu.memory_space<vmem>>, vector<1x64xf32>
    tpu.vector_store %arg9[%c4_13, %c0_14], %18 {strides = array<i32>} : memref<8x128xf32, #tpu.memory_space<vmem>>, vector<1x64xf32>,
    %c5 = arith.constant 5 : index
    %20 = memref.load %arg0[%c5] : memref<8xi32, #tpu.memory_space<smem>>
    %21 = arith.index_cast %20 : i32 to index
    %c0_15 = arith.constant 0 : index
    %22 = vector.load %arg1[%21, %c0_15] : memref<300x64xf32, #tpu.memory_space<vmem>>, vector<1x64xf32>
    %c5_16 = arith.constant 5 : index
    %c0_17 = arith.constant 0 : index
    %23 = vector.load %arg9[%c5_16, %c0_17] : memref<8x128xf32, #tpu.memory_space<vmem>>, vector<1x64xf32>
    tpu.vector_store %arg9[%c5_16, %c0_17], %22 {strides = array<i32>} : memref<8x128xf32, #tpu.memory_space<vmem>>, vector<1x64xf32>,
    %c6 = arith.constant 6 : index
    %24 = memref.load %arg0[%c6] : memref<8xi32, #tpu.memory_space<smem>>
    %25 = arith.index_cast %24 : i32 to index
    %c0_18 = arith.constant 0 : index
    %26 = vector.load %arg1[%25, %c0_18] : memref<300x64xf32, #tpu.memory_space<vmem>>, vector<1x64xf32>
    %c6_19 = arith.constant 6 : index
    %c0_20 = arith.constant 0 : index
    %27 = vector.load %arg9[%c6_19, %c0_20] : memref<8x128xf32, #tpu.memory_space<vmem>>, vector<1x64xf32>
    tpu.vector_store %arg9[%c6_19, %c0_20], %26 {strides = array<i32>} : memref<8x128xf32, #tpu.memory_space<vmem>>, vector<1x64xf32>,
    %c7 = arith.constant 7 : index
    %28 = memref.load %arg0[%c7] : memref<8xi32, #tpu.memory_space<smem>>
    %29 = arith.index_cast %28 : i32 to index
    %c0_21 = arith.constant 0 : index
    %30 = vector.load %arg1[%29, %c0_21] : memref<300x64xf32, #tpu.memory_space<vmem>>, vector<1x64xf32>
    %c7_22 = arith.constant 7 : index
    %c0_23 = arith.constant 0 : index
    %31 = vector.load %arg9[%c7_22, %c0_23] : memref<8x128xf32, #tpu.memory_space<vmem>>, vector<1x64xf32>
    tpu.vector_store %arg9[%c7_22, %c0_23], %30 {strides = array<i32>} : memref<8x128xf32, #tpu.memory_space<vmem>>, vector<1x64xf32>,
    %c0_24 = arith.constant 0 : index
    %c0_25 = arith.constant 0 : index
    %32 = vector.load %arg2[%c0_24, %c0_25] : memref<8x64xf32, #tpu.memory_space<vmem>>, vector<8x64xf32>
    %c0_26 = arith.constant 0 : index
    %c64 = arith.constant 64 : index
    %33 = vector.load %arg9[%c0_26, %c64] : memref<8x128xf32, #tpu.memory_space<vmem>>, vector<8x64xf32>
    tpu.vector_store %arg9[%c0_26, %c64], %32 {strides = array<i32>} : memref<8x128xf32, #tpu.memory_space<vmem>>, vector<8x64xf32>,
    %c0_27 = arith.constant 0 : index
    %c0_28 = arith.constant 0 : index
    %34 = vector.load %arg9[%c0_27, %c0_28] : memref<8x128xf32, #tpu.memory_space<vmem>>, vector<8x128xf32>
    %35 = arith.truncf %34 : vector<8x128xf32> to vector<8x128xbf16>
    %c0_29 = arith.constant 0 : index
    %c0_30 = arith.constant 0 : index
    %36 = vector.load %arg3[%c0_29, %c0_30] : memref<128x64xbf16, #tpu.memory_space<vmem>>, vector<128x64xbf16>
    %cst = arith.constant dense<0.000000e+00> : vector<8x64xf32>
    %37 = tpu.matmul %35, %36, %cst {dimension_numbers = #tpu.dot_dimension_numbers<[1], [0], [0], [1], [0, 0, 1, 1], [], []>} : vector<8x128xbf16>, vector<128x64xbf16>, vector<8x64xf32> -> vector<8x64xf32>
    %c0_31 = arith.constant 0 : index
    %c0_32 = arith.constant 0 : index
    %38 = vector.load %arg4[%c0_31, %c0_32] : memref<1x64xf32, #tpu.memory_space<vmem>>, vector<1x64xf32>
    %39 = vector.broadcast %38 : vector<1x64xf32> to vector<8x64xf32>
    %40 = arith.addf %37, %39 : vector<8x64xf32>
    %41 = math.tanh %40 : vector<8x64xf32>
    %c0_33 = arith.constant 0 : index
    %c0_34 = arith.constant 0 : index
    %42 = vector.load %arg8[%c0_33, %c0_34] : memref<8x64xf32, #tpu.memory_space<vmem>>, vector<8x64xf32>
    tpu.vector_store %arg8[%c0_33, %c0_34], %41 {strides = array<i32>} : memref<8x64xf32, #tpu.memory_space<vmem>>, vector<8x64xf32>,
    %43 = arith.truncf %41 : vector<8x64xf32> to vector<8x64xbf16>
    %c0_35 = arith.constant 0 : index
    %c0_36 = arith.constant 0 : index
    %44 = vector.load %arg5[%c0_35, %c0_36] : memref<64x384xbf16, #tpu.memory_space<vmem>>, vector<64x384xbf16>
    %cst_37 = arith.constant dense<0.000000e+00> : vector<8x384xf32>
    %45 = tpu.matmul %43, %44, %cst_37 {dimension_numbers = #tpu.dot_dimension_numbers<[1], [0], [0], [1], [0, 0, 1, 1], [], []>} : vector<8x64xbf16>, vector<64x384xbf16>, vector<8x384xf32> -> vector<8x384xf32>
    %c0_38 = arith.constant 0 : index
    %c0_39 = arith.constant 0 : index
    %46 = vector.load %arg6[%c0_38, %c0_39] : memref<1x384xf32, #tpu.memory_space<vmem>>, vector<1x384xf32>
    %47 = vector.broadcast %46 : vector<1x384xf32> to vector<8x384xf32>
    %48 = arith.addf %45, %47 : vector<8x384xf32>
    %c0_40 = arith.constant 0 : index
    %c0_41 = arith.constant 0 : index
    %49 = vector.load %arg7[%c0_40, %c0_41] : memref<8x384xf32, #tpu.memory_space<vmem>>, vector<8x384xf32>
    tpu.vector_store %arg7[%c0_40, %c0_41], %48 {strides = array<i32>} : memref<8x384xf32, #tpu.memory_space<vmem>>, vector<8x384xf32>,
    return
  }
}

</mosaic_0001>

<bundles_post_ra>
// kernel: tpu_custom_call.1
= control target key start
LH: loop header
LB: loop body
LE: loop exit
PB: predicated region body
PF: predicated region fallthrough
CT: control target
= control target key end

     0   :  { %14 = vsyncpa [#allocation5], 0  ;;  %s770_s0 = inlined_call_operand.vmem [shape: s32[8], index: 0, kind: input, shape index: {}]   ;;  %s771_s1 = inlined_call_operand.vmem [shape: f32[300,64], index: 1, kind: input, shape index: {}]   ;;  %s772_s2 = inlined_call_operand.vmem [shape: f32[8,64], index: 2, kind: input, shape index: {}]   ;;  %s773_s3 = inlined_call_operand.vmem [shape: bf16[128,64], index: 3, kind: input, shape index: {}]   ;;  %s774_s4 = inlined_call_operand.vmem [shape: f32[1,64], index: 4, kind: input, shape index: {}]   ;;  %s775_s5 = inlined_call_operand.vmem [shape: bf16[64,384], index: 5, kind: input, shape index: {}]   ;;  %s776_s6 = inlined_call_operand.vmem [shape: f32[1,384], index: 6, kind: input, shape index: {}]   ;;  %s777_s7 = inlined_call_operand.hbm [shape: f32[8,384], index: 7, kind: output, shape index: {0}]   ;;  %s778_s8 = inlined_call_operand.hbm [shape: f32[8,64], index: 8, kind: output, shape index: {1}]  }
   0x1   :  { %15 = vsyncpa [#allocation4], 0 }
   0x2   :  { %16 = vsyncpa [#allocation8], 0  ;;  %s23_s29 = sshll.u32 %s770_s0, 4  ;;  %s24_s29 = int_to_ptr.vmem [resolvable:$true] %s23_s29 }
   0x3   :  { %s531_s30 = scalar_lea.vmem %s24_s29, 16  ;;  %p536_p1 = scmp.lt.s32.totalorder %s24_s29, %s24_s29 }
   0x4   :  { %p532_p0 = scmp.ne.s32.totalorder %s24_s29, %s531_s30  ;;  %p537_p2 = scmp.lt.s32.totalorder %s531_s30, %s531_s30 }
   0x6   :  { %p538_p3 = por %p537_p2, %p536_p1 }
   0x8   :  { %p539_p4 = pnand %p538_p3, %p532_p0 }
   0xa   :  { %542 = shalt.err (!%p539_p4)
}
   0xb   :  { %s589_s9 = smov [#allocation3]  }
   0xc   :  { %26 = dma.vmem_to_smem %s24_s29, 16, %s589_s9, [#allocation5]  }
   0xd   :  { %583 = dma.done.wait [#allocation5], 16  }
   0xe   :  { %584 = vsyncadd [#allocation5], 4294967280 }
   0xf   :  { %42 = sfence }
  0x10   :  { %v77_v0 = vld [vmem:[%s772_s2] sm:$0xff]  ;;  %v505_v1 = vld [vmem:[%s773_s3 + $0x38] sm:$0xff]   ;;  %s590_s0 = smov 64   ;;  %v591_v2 = vmov 0.0   ;;  %v506_v3 = vld [vmem:[%s773_s3 + $0x30] sm:$0xff]   ;;  %s44_s2 = sld [smem:[#allocation3]] }
  0x11   :  { %79 = vrot.lane.b32.xlu0 %v77_v0, %s590_s0  ;;  %466 = vmatprep.subr.bf16.mxu0 %v591_v2  ;;  %v507_v4 = vld [vmem:[%s773_s3 + $0x28] sm:$0xff]   ;;  %vm592_vm0 = vmmov 0   ;;  %s422_s18 = sld [smem:[#allocation3 + $0x1]]  ;;  %v508_v5 = vld [vmem:[%s773_s3 + $0x20] sm:$0xff]   ;;  %vm47_vm1 = vcmask 516096   ;;  %v509_v6 = vld [vmem:[%s773_s3 + $0x18] sm:$0xff]  }
  0x12   :  { %467 = vmatpush3.bf16.msra.mxu0 %v505_v1  ;;  %482 = vmatprep.mubr.msk.bf16.mxu0 %vm592_vm0, %v591_v2  ;;  %s423_s19 = sld [smem:[#allocation3 + $0x2]]  ;;  %v510_v14 = vld [vmem:[%s773_s3 + $0x10] sm:$0xff]   ;;  %v511_v16 = vld [vmem:[%s773_s3 + $0x8] sm:$0xff]   ;;  %v512_v17 = vld [vmem:[%s773_s3] sm:$0xff]   ;;  %vm82_vm2 = vcmask 1048064   ;;  %v593_v28 = vmov 0  }
  0x13   :  { %468 = vmatprep.subr.bf16.mxu0 %v591_v2  ;;  %s424_s20 = sld [smem:[#allocation3 + $0x3]]  ;;  %v513_v21 = vld [vmem:[%s775_s5 + $0x4c] ss:$12 sps:$4 sm:$0xff]   ;;  %v515_v22 = vld [vmem:[%s775_s5 + $0x48] ss:$12 sps:$4 sm:$0xff]   ;;  %333 = vmatprep.mubr.bf16.mxu1 %v593_v28  ;;  %vm198_vm3 = vcmask 523264  }
  0x14   :  { %s425_s23 = sld [smem:[#allocation3 + $0x4]]  ;;  %309 = vmatprep.subr.bf16.mxu1 %v513_v21  ;;  %v516_v23 = vld [vmem:[%s775_s5 + $0x34] ss:$12 sps:$4 sm:$0xff]   ;;  %v518_v24 = vld [vmem:[%s775_s5 + $0x30] ss:$12 sps:$4 sm:$0xff]  }
  0x15   :  { %s426_s24 = sld [smem:[#allocation3 + $0x5]]  ;;  %310 = vmatpush1.bf16.msra.mxu1 %v515_v22  ;;  %v519_v25 = vld [vmem:[%s775_s5 + $0x1c] ss:$12 sps:$4 sm:$0xff]   ;;  %v521_v26 = vld [vmem:[%s775_s5 + $0x18] ss:$12 sps:$4 sm:$0xff]  }
  0x16   :  { %469 = vmatpush3.bf16.msra.mxu0 %v506_v3  ;;  %s45_s27 = scalar_lea.vmem %s771_s1, %s44_s2  ;;  %s427_s28 = sld [smem:[#allocation3 + $0x6]]  ;;  %311 = vmatprep.subr.bf16.mxu1 %v516_v23  ;;  %v522_v27 = vld [vmem:[%s775_s5 + $0x4] ss:$12 sps:$4 sm:$0xff]   ;;  %v524_v29 = vld [vmem:[%s775_s5] ss:$12 sps:$4 sm:$0xff]  }
  0x17   :  { %470 = vmatprep.subr.bf16.mxu0 %v591_v2  ;;  %v46_v7 = vld [vmem:[%s45_s27] sm:$0x1]  ;;  %s50_s11 = scalar_lea.vmem %s771_s1, %s422_s18  ;;  %s428_s12 = sld [smem:[#allocation3 + $0x7]]  ;;  %v525_v37 = vld [vmem:[%s775_s5 + $0x50] ss:$12 sps:$4 sm:$0xff]  }
  0x18   :  { %48 = vst.msk [vmem:[#allocation2] sm:$0x1] %vm47_vm1, %v46_v7  ;;  %v51_v8 = vld [vmem:[%s50_s11] sm:$0x1]  ;;  %s54_s14 = scalar_lea.vmem %s771_s1, %s423_s19  ;;  %v526_v39 = vld [vmem:[%s775_s5 + $0x38] ss:$12 sps:$4 sm:$0xff]  }
  0x19   :  { %52 = vst.msk [vmem:[#allocation2 + $0x1] sm:$0x1] %vm47_vm1, %v51_v8  ;;  %v55_v9 = vld [vmem:[%s54_s14] sm:$0x1]  ;;  %s58_s17 = scalar_lea.vmem %s771_s1, %s424_s20  ;;  %312 = vmatpush1.bf16.msra.mxu1 %v518_v24  ;;  %v528_v41 = vld [vmem:[%s775_s5 + $0x8] ss:$12 sps:$4 sm:$0xff]  }
  0x1a   :  { %471 = vmatpush3.bf16.msra.mxu0 %v507_v4  ;;  %56 = vst.msk [vmem:[#allocation2 + $0x2] sm:$0x1] %vm47_vm1, %v55_v9  ;;  %v59_v10 = vld [vmem:[%s58_s17] sm:$0x1]  ;;  %s62_s21 = scalar_lea.vmem %s771_s1, %s425_s23  ;;  %313 = vmatprep.subr.bf16.mxu1 %v519_v25  ;;  %s594_s11 = smov [#allocation7]  }
  0x1b   :  { %472 = vmatprep.subr.bf16.mxu0 %v591_v2  ;;  %60 = vst.msk [vmem:[#allocation2 + $0x3] sm:$0x1] %vm47_vm1, %v59_v10  ;;  %v63_v11 = vld [vmem:[%s62_s21] sm:$0x1]  ;;  %s66_s25 = scalar_lea.vmem %s771_s1, %s426_s24 }
  0x1c   :  { %64 = vst.msk [vmem:[#allocation2 + $0x4] sm:$0x1] %vm47_vm1, %v63_v11  ;;  %v67_v12 = vld [vmem:[%s66_s25] sm:$0x1]  ;;  %s70_s27 = scalar_lea.vmem %s771_s1, %s427_s28 }
  0x1d   :  { %68 = vst.msk [vmem:[#allocation2 + $0x5] sm:$0x1] %vm47_vm1, %v67_v12  ;;  %v71_v13 = vld [vmem:[%s70_s27] sm:$0x1]  ;;  %s74_s30 = scalar_lea.vmem %s771_s1, %s428_s12  ;;  %314 = vmatpush1.bf16.msra.mxu1 %v521_v26  ;;  %s401_s12 = sshll.u32 %s594_s11, 4  ;;  %s402_s12 = int_to_ptr.vmem [resolvable:$true] %s401_s12 }
  0x1e   :  { %473 = vmatpush3.bf16.msra.mxu0 %v508_v5  ;;  %72 = vst.msk [vmem:[#allocation2 + $0x6] sm:$0x1] %vm47_vm1, %v71_v13  ;;  %v75_v15 = vld [vmem:[%s74_s30] sm:$0x1]  ;;  %315 = vmatprep.subr.bf16.mxu1 %v522_v27  ;;  %s543_s13 = scalar_lea.vmem %s402_s12, 128  ;;  %p548_p6 = scmp.lt.s32.totalorder %s402_s12, %s402_s12 }
  0x1f   :  { %474 = vmatprep.subr.bf16.mxu0 %v591_v2  ;;  %76 = vst.msk [vmem:[#allocation2 + $0x7] sm:$0x1] %vm47_vm1, %v75_v15  ;;  %v429_v30 = vld [vmem:[%s774_s4] ss:$0 sm:$0xff]  ;;  %p544_p5 = scmp.ne.s32.totalorder %s402_s12, %s543_s13  ;;  %p549_p7 = scmp.lt.s32.totalorder %s543_s13, %s543_s13 }
  0x20   :  { %v527_v40 = vld [vmem:[%s775_s5 + $0x20] ss:$12 sps:$4 sm:$0xff]  }
  0x21   :  { %316 = vmatpush1.bf16.msra.mxu1 %v524_v29  ;;  %p550_p8 = por %p549_p7, %p548_p6 }
  0x22   :  { %475 = vmatpush3.bf16.msra.mxu0 %v509_v6  ;;  %486 = vmatprep.subr.bf16.mxu1 %v591_v2 }
  0x23   :  { %476 = vmatprep.subr.bf16.mxu0 %v591_v2  ;;  %p551_p9 = pnand %p550_p8, %p544_p5 }
  0x26   :  { %477 = vmatpush3.bf16.msra.mxu0 %v510_v14 }
  0x27   :  { %478 = vmatprep.subr.bf16.mxu0 %v591_v2 }
  0x2a   :  { %479 = vmatpush3.bf16.msra.mxu0 %v511_v16 }
  0x2b   :  { %480 = vmatprep.subr.bf16.mxu0 %v591_v2 }
  0x2e   :  { %481 = vmatpush3.bf16.msra.mxu0 %v512_v17 }
  0x83   :  { %v80_v18 = vpop.permute.xlu0 %79 }
  0x84   :  { %83 = vst.msk [vmem:[#allocation2] sm:$0xff] %vm82_vm2, %v80_v18 }
  0x8b   :  { %v84_v19 = vld [vmem:[#allocation2] sm:$0xff] }
  0x8c   :  { %v85_v20 = vpack.c.bf16 %v84_v19, %v84_v19 }
  0x8e   :  { %483 = vmatmul.mubr.bf16.vlgmr.msra.gmra.mxu0 %v85_v20 }
 0x14e   :  { %v191_v31 = vpop.f32.mrf.mxu0 }
 0x14f   :  { %v192_v32 = vadd.f32 %v429_v30, %v191_v31 }
 0x150   :  { %v484_v33 = vpop.f32.mrf.mxu0 }
 0x151   :  { %529 = vtanh.f32 %v192_v32 }
 0x152   :  { %v194_v34 = vpop.f32.mrf.mxu0 }
 0x154   :  { %v485_v35 = vpop.f32.mrf.mxu0 }
 0x15e   :  { %v530_v36 = vpop.eup %529 }
 0x15f   :  { %v200_v38 = vpack.c.bf16 %v530_v36, %v530_v36  ;;  %199 = vst.msk [vmem:[#allocation7] sm:$0xff] %vm198_vm3, %v530_v36 }
 0x161   :  { %450 = vmatmul.mubr.msk.bf16.vlgmr.msra.gmra.mxu1 %vm198_vm3, %v200_v38 }
 0x162   :  { %487 = vmatpush3.bf16.msra.mxu1 %v525_v37  ;;  %494 = vmatprep.mubr.msk.bf16.mxu1 %vm592_vm0, %v591_v2 }
 0x163   :  { %488 = vmatprep.subr.bf16.mxu1 %v591_v2 }
 0x166   :  { %489 = vmatpush3.bf16.msra.mxu1 %v526_v39 }
 0x167   :  { %490 = vmatprep.subr.bf16.mxu1 %v591_v2 }
 0x16a   :  { %491 = vmatpush3.bf16.msra.mxu1 %v527_v40 }
 0x16b   :  { %492 = vmatprep.subr.bf16.mxu1 %v591_v2 }
 0x16e   :  { %493 = vmatpush3.bf16.msra.mxu1 %v528_v41 }
 0x171   :  { %495 = vmatmul.mubr.msk.bf16.vlgmr.msra.gmra.mxu1 %vm198_vm3, %v200_v38 }
 0x172   :  { %554 = shalt.err (!%p551_p9)
}
 0x173   :  { %404 = dma.vmem_to_hbm [thread:$0]  %s402_s12, 128, %s778_s8, [#allocation8]   ;;  %v219_v42 = vlaneseq  ;;  %v217_v45 = vld [vmem:[%s776_s6] sm:$0x7] }
 0x174   :  { %s595_s8 = smov [#allocation6]  }
 0x175   :  { %v220_v43 = vshrl.u32 %v219_v42, 7  ;;  %s391_s15 = sshll.u32 %s595_s8, 4  ;;  %s392_s15 = int_to_ptr.vmem [resolvable:$true] %s391_s15 }
 0x176   :  { %s563_s6 = scalar_lea.vmem %s392_s15, 384  ;;  %p568_p11 = scmp.lt.s32.totalorder %s392_s15, %s392_s15 }
 0x177   :  { %v221_v44 = vsub.s32 0, %v220_v43  ;;  %v225_v46 = vsub.s32 1, %v220_v43  ;;  %v229_v55 = vsub.s32 2, %v220_v43  ;;  %p564_p10 = scmp.ne.s32.totalorder %s392_s15, %s563_s6  ;;  %p569_p12 = scmp.lt.s32.totalorder %s563_s6, %s563_s6 }
 0x179   :  { %v222_v47 = vrot.slane %v217_v45, %v221_v44  ;;  %v226_v48 = vrot.slane %v217_v45, %v225_v46  ;;  %v230_v56 = vrot.slane %v217_v45, %v229_v55  ;;  %p570_p13 = por %p569_p12, %p568_p11 }
 0x17b   :  { %p571_p0 = pnand %p570_p13, %p564_p10 }
 0x221   :  { %v335_v49 = vpop.f32.mrf.mxu1 }
 0x222   :  { %v336_v50 = vadd.f32 %v335_v49, %v222_v47 }
 0x223   :  { %v337_v51 = vpop.f32.mrf.mxu1 }
 0x224   :  { %382 = vst [vmem:[#allocation6] sm:$0xff] %v336_v50  ;;  %v338_v52 = vadd.f32 %v337_v51, %v226_v48 }
 0x225   :  { %v339_v53 = vpop.f32.mrf.mxu1 }
 0x226   :  { %383 = vst [vmem:[#allocation6 + $0x8] sm:$0xff] %v338_v52 }
 0x227   :  { %v340_v54 = vpop.f32.mrf.mxu1 }
 0x231   :  { %v376_v57 = vpop.f32.mrf.mxu1 }
 0x232   :  { %v377_v58 = vadd.f32 %v376_v57, %v230_v56 }
 0x233   :  { %v496_v59 = vpop.f32.mrf.mxu1 }
 0x234   :  { %384 = vst [vmem:[#allocation6 + $0x10] sm:$0xff] %v377_v58 }
 0x235   :  { %v379_v60 = vpop.f32.mrf.mxu1 }
 0x236   :  { %574 = shalt.err (!%p571_p0)
}
 0x237   :  { %394 = dma.vmem_to_hbm [thread:$0]  %s392_s15, 384, %s777_s7, [#allocation4]   ;;  %v497_v61 = vpop.f32.mrf.mxu1 }
 0x238   :  { %585 = dma.done.wait [#allocation4], 384  }
 0x239   :  { %586 = vsyncadd [#allocation4], 4294966912 }
 0x23a   :  { %587 = dma.done.wait [#allocation8], 128  }
 0x23b   :  { %588 = vsyncadd [#allocation8], 4294967168 }
 0x23c   :  { %411 = vsyncpa [#allocation4], 1 }
 0x23d   :  { %412 = vsyncpa [#allocation8], 1 }
 0x23e   :  { %413 = vsyncpa [#allocation5], 1 }

</bundles_post_ra>
